<compile_context>
chip_gen: v7x
topology: tpu7x:2x2x1
jax: 0.10.0
libtpu: 0.0.40
codegen_flags: <defaults>
</compile_context>

<pallas_src>
import functools

import jax
import jax.numpy as jnp
from jax.experimental import pallas as pl
from jax.experimental.pallas import tpu as pltpu

_LANE = 128


def _round_up(x, m):
    return (x + m - 1) // m * m


def _round_down(x, m):
    return x // m * m


def _plan_tiles(batch, C, itemsize, n_row_ops):
    """Pick the batch tile and a VMEM limit.

    n_row_ops: number of (1, batch) f32 row operands fed to the kernel (y[, p]).
    """
    c_vmem = _round_up(C, _LANE)     # lane padding of the native (TB, C) blocks
    c_sub = _round_up(C, 8)          # sublane padding of transposed f32 temps
    b_ceil = _round_up(batch, _LANE)

    # ~3 MiB of logical bytes per matrix-input block (2-4 MiB DMA sweet spot).
    tile_b = _round_down(max((3 << 20) // max(C * itemsize, 1), _LANE), _LANE)
    tile_b = max(_LANE, min(tile_b, 8192, b_ceil))

    # Prefer >= 2 grid steps when the batch allows (megacore on v7x).
    if tile_b >= b_ceil and b_ceil >= 2 * _LANE and batch > _LANE:
        tile_b = _round_up(-(-batch // 2), _LANE)

    def vmem_est(tb):
        inputs = 2 * 2 * tb * c_vmem * itemsize            # q, pp double-buffered
        rows = 2 * (n_row_ops + 1) * 8 * tb * 4            # y/p rows + packed out
        temps = 6 * c_sub * tb * 4                         # transposes + f32 temps
        return inputs + rows + temps

    while tile_b > _LANE and vmem_est(tile_b) > (20 << 20):
        tile_b = max(_LANE, _round_down(tile_b // 2, _LANE))

    vmem_limit = int(min(max(2 * vmem_est(tile_b), 32 << 20), 48 << 20))
    return tile_b, vmem_limit


def _echo_kernel(*refs, mode, binary_y, batch, tile_b, Bparam, eps):
    """One batch tile.  Blocks arrive in native (tile_b, C) layout and are
    transposed in-kernel so classes sit on sublanes and batch on the 128-lane
    axis.

    mode == 'exact'      : refs = (q, pp, y, out[1, TB])
    mode == 'var_link'   : refs = (q, pp, y, log_prior, out[2, TB])
    mode == 'var_nolink' : refs = (q, pp, y, eta, p, out[2, TB])
    """
    if mode == "exact":
        q_ref, pp_ref, y_ref, out_ref = refs
    elif mode == "var_link":
        q_ref, pp_ref, y_ref, lp_ref, out_ref = refs
    else:
        q_ref, pp_ref, y_ref, eta_ref, p_ref, out_ref = refs

    # Native-dtype DMA; widen on the VPU, transpose on the XLU (no XLA copy).
    q = jnp.transpose(q_ref[...].astype(jnp.float32))     # (C, TB)
    pp = jnp.transpose(pp_ref[...].astype(jnp.float32))   # (C, TB)
    y = y_ref[...].astype(jnp.float32)                    # (1, TB)

    if binary_y:
        # Single full-tile log: select p vs (1 - p) before the log.
        pp_sel = jnp.where(y > 0.5, pp, 1.0 - pp)
        loss_row = -jnp.sum(q * jnp.log(pp_sel), axis=0, keepdims=True)
    else:
        loss_pos = jnp.sum(q * jnp.log(pp), axis=0, keepdims=True)
        loss_neg = jnp.sum(q * jnp.log(1.0 - pp), axis=0, keepdims=True)
        loss_row = -(y * loss_pos + (1.0 - y) * loss_neg)

    if mode == "exact":
        out_ref[...] = loss_row
        return

    if mode == "var_link":
        # Batch-independent log(prior), precomputed in the wrapper.  (C, 1)
        log_prior = lp_ref[...].astype(jnp.float32)
        kld_row = jnp.sum(q * (jnp.log(q) - log_prior), axis=0, keepdims=True)
    else:
        eta = eta_ref[...].astype(jnp.float32)             # (C, 1)
        pvec = p_ref[...].astype(jnp.float32)              # (1, TB)
        alpha_c = Bparam * jnp.abs(eta) + eps              # (C, 1)
        alpha = alpha_c * jnp.maximum(eta * pvec, 0.0) + 1e-6   # (C, TB)
        sum_alpha = jnp.sum(alpha, axis=0, keepdims=True)       # (1, TB)
        # kld = sum_c q*log(q/alpha) + log(sum_alpha)*sum_c q
        # (one full-tile log + exact divide instead of two full-tile logs).
        kld_row = (jnp.sum(q * jnp.log(q / alpha), axis=0, keepdims=True)
                   + jnp.log(sum_alpha) * jnp.sum(q, axis=0, keepdims=True))

    # Mask lanes past the (possibly ragged) end of the batch before the
    # wrapper-side reduction; ragged output writes drop them anyway.
    if batch % tile_b != 0:
        col = pl.program_id(0) * tile_b + jax.lax.broadcasted_iota(
            jnp.int32, (1, tile_b), 1)
        kld_row = jnp.where(col < batch, kld_row, 0.0)

    out_ref[0:1, :] = loss_row
    out_ref[1:2, :] = kld_row


def echo_chamber_loss(q_probs, p_probs, eta, y, p=None, *,
                      s, h, B, model_type='exact-posterior',
                      anneal_param=1.0, is_link=True, binary_y=True):
    """Pallas wrapper. Returns (per-sample loss (batch,), scalar kld).

    binary_y=True assumes y in {0, 1} (single-log loss); set False for soft
    labels to keep the exact y*log(p) + (1-y)*log(1-p) blend.
    """
    batch, C = q_probs.shape
    itemsize = jnp.dtype(q_probs.dtype).itemsize
    variational = model_type != 'exact-posterior'

    n_row_ops = 1 + (1 if (variational and not is_link) else 0)
    tile_b, vmem_limit = _plan_tiles(batch, C, itemsize, n_row_ops)
    n_tiles = pl.cdiv(batch, tile_b)

    y_row = jnp.asarray(y, jnp.float32).reshape(1, batch)   # free reshape

    mat_spec = pl.BlockSpec((tile_b, C), lambda i: (i, 0))
    row_spec = pl.BlockSpec((1, tile_b), lambda i: (0, i))
    col_spec = pl.BlockSpec((C, 1), lambda i: (0, 0))

    if not variational:
        mode = "exact"
        operands = (q_probs, p_probs, y_row)
        in_specs = [mat_spec, mat_spec, row_spec]
        out_shape = jax.ShapeDtypeStruct((1, batch), jnp.float32)
        out_specs = row_spec
    elif is_link:
        mode = "var_link"
        eta_f = jnp.asarray(eta, jnp.float32).reshape(-1)
        abs_eta = jnp.abs(eta_f)
        alpha = s * (1.0 - abs_eta) + h * abs_eta
        log_prior = (jnp.log(alpha) - jnp.log(alpha.sum())).reshape(C, 1)
        operands = (q_probs, p_probs, y_row, log_prior)
        in_specs = [mat_spec, mat_spec, row_spec, col_spec]
        out_shape = jax.ShapeDtypeStruct((2, batch), jnp.float32)
        out_specs = pl.BlockSpec((2, tile_b), lambda i: (0, i))
    else:
        mode = "var_nolink"
        if p is None:
            raise ValueError("p is required when is_link=False")
        eta_col = jnp.asarray(eta, jnp.float32).reshape(C, 1)
        p_row = jnp.asarray(p, jnp.float32).reshape(1, batch)
        operands = (q_probs, p_probs, y_row, eta_col, p_row)
        in_specs = [mat_spec, mat_spec, row_spec, col_spec, row_spec]
        out_shape = jax.ShapeDtypeStruct((2, batch), jnp.float32)
        out_specs = pl.BlockSpec((2, tile_b), lambda i: (0, i))

    kernel = functools.partial(
        _echo_kernel, mode=mode, binary_y=binary_y, batch=batch,
        tile_b=tile_b, Bparam=float(B), eps=1e-10)

    n_logs = 1 if (not variational and binary_y) else 2
    cost = pl.CostEstimate(
        flops=int(8 * batch * C),
        transcendentals=int(n_logs * batch * C),
        bytes_accessed=int(2 * batch * C * itemsize + 16 * batch + 8 * C))

    result = pl.pallas_call(
        kernel,
        grid=(n_tiles,),
        in_specs=in_specs,
        out_specs=out_specs,
        out_shape=out_shape,
        compiler_params=pltpu.CompilerParams(
            dimension_semantics=("parallel",),
            vmem_limit_bytes=vmem_limit),
        cost_estimate=cost,
    )(*operands)

    if not variational:
        return result[0], jnp.float32(0.0)
    loss_row = result[0]
    total = result[1].sum()
    kld = anneal_param * (total if is_link else total / batch)
    return loss_row, kld


def echo_chamber_loss_ref(q, pp, eta, y, p, *, s, h, B,
                          model_type, anneal_param, is_link):
    """Pure-JAX reference mirroring the PyTorch forward."""
    eps = 1e-10
    q = q.astype(jnp.float32)
    pp = pp.astype(jnp.float32)
    loss_neg = (q * jnp.log(1.0 - pp)).sum(axis=-1)
    loss_pos = (q * jnp.log(pp)).sum(axis=-1)
    kld = jnp.float32(0.0)
    if model_type != 'exact-posterior':
        if is_link:
            alpha = s * (1.0 - jnp.abs(eta)) + h * jnp.abs(eta)
            prior = alpha / alpha.sum(axis=-1)
            kld = (q * (jnp.log(q) - jnp.log(prior))).sum()
        else:
            alpha = B * jnp.abs(eta) + eps
            c_sim = jnp.maximum(jnp.einsum('c,b->bc', eta, p), 0.0)
            alpha = jnp.einsum('c,bc->bc', alpha, c_sim) + 1e-6
            prior = jnp.einsum('bc,b->bc', alpha, 1.0 / alpha.sum(axis=-1))
            kld = (q * (jnp.log(q) - jnp.log(prior))).sum(axis=1).mean()
    return -(y * loss_pos + (1 - y) * loss_neg), anneal_param * kld


if __name__ == "__main__":
    s_param, h_param, B_param = 2.0, 0.5, 3.0
    anneal = 0.7
    cases = [
        dict(model_type='exact-posterior', is_link=True, binary_y=True),
        dict(model_type='exact-posterior', is_link=True, binary_y=False),
        dict(model_type='variational', is_link=True, binary_y=True),
        dict(model_type='variational', is_link=False, binary_y=True),
    ]

    def make_inputs(key, batch, C):
        k1, k2, k3, k4, k5 = jax.random.split(key, 5)
        q_probs = jax.nn.softmax(jax.random.normal(k1, (batch, C)), axis=-1)
        p_probs = jax.nn.sigmoid(jax.random.normal(k2, (batch, C))) * 0.98 + 0.01
        eta = jax.random.uniform(k3, (C,), minval=-1.0, maxval=1.0)
        y = jax.random.bernoulli(k4, 0.5, (batch,)).astype(jnp.float32)
        p_vec = jax.random.uniform(k5, (batch,), minval=0.1, maxval=1.0)
        return q_probs, p_probs, eta, y, p_vec

    key = jax.random.PRNGKey(0)
    # (8, 16): single tile, block larger than the array (fully ragged).
    # (300, 64): two batch tiles (256 + ragged 44), exercises megacore split.
    for shape_i, (batch, C) in enumerate([(8, 16), (300, 64)]):
        q_probs, p_probs, eta, y, p_vec = make_inputs(
            jax.random.fold_in(key, shape_i), batch, C)
        for cfg in cases:
            loss, kld = echo_chamber_loss(
                q_probs, p_probs, eta, y, p_vec,
                s=s_param, h=h_param, B=B_param, anneal_param=anneal, **cfg)
            loss = jax.block_until_ready(loss)
            kld = jax.block_until_ready(kld)

            ref_cfg = {k: v for k, v in cfg.items() if k != 'binary_y'}
            loss_ref, kld_ref = echo_chamber_loss_ref(
                q_probs, p_probs, eta, y, p_vec,
                s=s_param, h=h_param, B=B_param, anneal_param=anneal, **ref_cfg)

            assert jnp.allclose(loss, loss_ref, rtol=3e-5, atol=1e-5), (batch, C, cfg)
            assert jnp.allclose(kld, kld_ref, rtol=5e-4, atol=1e-4), (batch, C, cfg)

    print("KERNEL_OK")
</pallas_src>

<mosaic_0001>
module attributes {stable_mosaic.version = 11 : i64} {
  func.func @_echo_kernel(%arg0: i32, %arg1: memref<128x16xf32, #tpu.memory_space<vmem>>, %arg2: memref<128x16xf32, #tpu.memory_space<vmem>>, %arg3: memref<1x128xf32, #tpu.memory_space<vmem>>, %arg4: memref<1x128xf32, #tpu.memory_space<vmem>>) attributes {dimension_semantics = [#tpu.dimension_semantics<parallel>], iteration_bounds = array<i64: 1>, scalar_prefetch = 0 : i64, scratch_operands = 0 : i64, tpu.core_type = #tpu.core_type<tc>, window_params = [{transform_indices = @transform_0, window_bounds = array<i64: 128, 16>}, {transform_indices = @transform_1, window_bounds = array<i64: 128, 16>}, {transform_indices = @transform_2, window_bounds = array<i64: 1, 128>}, {transform_indices = @transform_3, window_bounds = array<i64: 1, 128>}]} {
    %c0 = arith.constant 0 : index
    %c0_0 = arith.constant 0 : index
    %0 = vector.load %arg1[%c0, %c0_0] : memref<128x16xf32, #tpu.memory_space<vmem>>, vector<128x16xf32>
    %1 = tpu.transpose %0, [1, 0] : vector<128x16xf32> -> vector<16x128xf32>
    %c0_1 = arith.constant 0 : index
    %c0_2 = arith.constant 0 : index
    %2 = vector.load %arg2[%c0_1, %c0_2] : memref<128x16xf32, #tpu.memory_space<vmem>>, vector<128x16xf32>
    %3 = tpu.transpose %2, [1, 0] : vector<128x16xf32> -> vector<16x128xf32>
    %c0_3 = arith.constant 0 : index
    %c0_4 = arith.constant 0 : index
    %4 = vector.load %arg3[%c0_3, %c0_4] : memref<1x128xf32, #tpu.memory_space<vmem>>, vector<1x128xf32>
    %cst = arith.constant 5.000000e-01 : f32
    %5 = vector.broadcast %cst : f32 to vector<1x128xf32>
    %6 = arith.cmpf ogt, %4, %5 : vector<1x128xf32>
    %cst_5 = arith.constant 1.000000e+00 : f32
    %7 = vector.broadcast %cst_5 : f32 to vector<16x128xf32>
    %8 = arith.subf %7, %3 : vector<16x128xf32>
    %9 = vector.shape_cast %6 : vector<1x128xi1> to vector<1x128xi1>
    %10 = vector.broadcast %9 : vector<1x128xi1> to vector<16x128xi1>
    %11 = arith.select %10, %3, %8 : vector<16x128xi1>, vector<16x128xf32>
    %12 = math.log %11 : vector<16x128xf32>
    %13 = arith.mulf %1, %12 : vector<16x128xf32>
    %cst_6 = arith.constant dense<0.000000e+00> : vector<128xf32>
    %14 = vector.multi_reduction <add>, %13, %cst_6 [0] : vector<16x128xf32> to vector<128xf32>
    %15 = vector.shape_cast %14 : vector<128xf32> to vector<1x128xf32>
    %cst_7 = arith.constant 0.000000e+00 : f32
    %16 = vector.broadcast %cst_7 : f32 to vector<1x128xf32>
    %17 = arith.subf %16, %15 : vector<1x128xf32>
    %c0_8 = arith.constant 0 : index
    %c0_9 = arith.constant 0 : index
    %18 = vector.load %arg4[%c0_8, %c0_9] : memref<1x128xf32, #tpu.memory_space<vmem>>, vector<1x128xf32>
    tpu.vector_store %arg4[%c0_8, %c0_9], %17 {strides = array<i32>} : memref<1x128xf32, #tpu.memory_space<vmem>>, vector<1x128xf32>,
    return
  }
  func.func @transform_0(%arg0: i32) -> (i32, i32) {
    %c0_i32 = arith.constant 0 : i32
    %c0_i32_0 = arith.constant 0 : i32
    return %arg0, %c0_i32 : i32, i32
  }
  func.func @transform_1(%arg0: i32) -> (i32, i32) {
    %c0_i32 = arith.constant 0 : i32
    %c0_i32_0 = arith.constant 0 : i32
    return %arg0, %c0_i32 : i32, i32
  }
  func.func @transform_2(%arg0: i32) -> (i32, i32) {
    %c0_i32 = arith.constant 0 : i32
    %c0_i32_0 = arith.constant 0 : i32
    return %c0_i32, %arg0 : i32, i32
  }
  func.func @transform_3(%arg0: i32) -> (i32, i32) {
    %c0_i32 = arith.constant 0 : i32
    %c0_i32_0 = arith.constant 0 : i32
    return %c0_i32, %arg0 : i32, i32
  }
}

</mosaic_0001>

<bundles_post_ra>
// kernel: tpu_custom_call.1
= control target key start
LH: loop header
LB: loop body
LE: loop exit
PB: predicated region body
PF: predicated region fallthrough
CT: control target
= control target key end

     0   :  { %8 = vsyncpa [#allocation3], 0  ;;  %s329_s0 = inlined_call_operand.hbm [shape: f32[8,16], index: 0, kind: input, shape index: {}]   ;;  %s330_s1 = inlined_call_operand.hbm [shape: f32[8,16], index: 1, kind: input, shape index: {}]   ;;  %s331_s2 = inlined_call_operand.vmem [shape: f32[1,8], index: 2, kind: input, shape index: {}]   ;;  %s332_s3 = inlined_call_operand.hbm [shape: f32[1,8], index: 3, kind: output, shape index: {}]  }
   0x1   :  { %9 = vsyncpa [#allocation6], 0 }
   0x2   :  { %10 = vsyncpa [#allocation4], 0 }
   0x3   :  { %15 = vsyncadd [#allocation3], 1920  ;;  %s264_s12 = smov [#allocation2]   ;;  %s192_s16 = scalar_lea.hbm %s329_s0, 128 }
   0x4   :  { %s16_s13 = sshll.u32 %s264_s12, 4  ;;  %p193_p0 = scmp.ne.s32.totalorder %s329_s0, %s192_s16  ;;  %s17_s13 = int_to_ptr.vmem [resolvable:$true] %s16_s13 }
   0x5   :  { %p196_p1 = scmp.lt.u32.totalorder %s192_s16, %s329_s0 }
   0x7   :  { %p198_p2 = pnand %p196_p1, %p193_p0 }
   0x9   :  { %201 = shalt.err (!%p198_p2)
}
   0xa   :  { %s202_s21 = scalar_lea.vmem %s17_s13, 128  ;;  %s206_s22 = scalar_lea.vmem %s17_s13, 2048 }
   0xb   :  { %p203_p3 = scmp.ne.s32.totalorder %s17_s13, %s202_s21  ;;  %p207_p4 = scmp.lt.s32.totalorder %s17_s13, %s17_s13 }
   0xc   :  { %p208_p5 = scmp.lt.s32.totalorder %s206_s22, %s202_s21 }
   0xe   :  { %p209_p6 = por %p208_p5, %p207_p4 }
  0x10   :  { %p210_p7 = pnand %p209_p6, %p203_p3 }
  0x12   :  { %213 = shalt.err (!%p210_p7)
}
  0x13   :  { %s265_s23 = smov 128   ;;  %s266_s24 = smov 8  }
  0x14   :  { %22 = dma.hbm_to_vmem [thread:$0]  %s329_s0, 128, %s17_s13, [#allocation3], %s265_s23, %s265_s23, %s266_s24  }
  0x15   :  { %27 = vsyncadd [#allocation6], 1920  ;;  %s267_s27 = smov [#allocation5]   ;;  %s214_s4 = scalar_lea.hbm %s330_s1, 128 }
  0x16   :  { %s28_s28 = sshll.u32 %s267_s27, 4  ;;  %p215_p8 = scmp.ne.s32.totalorder %s330_s1, %s214_s4  ;;  %s29_s28 = int_to_ptr.vmem [resolvable:$true] %s28_s28 }
  0x17   :  { %p218_p9 = scmp.lt.u32.totalorder %s214_s4, %s330_s1 }
  0x19   :  { %p220_p10 = pnand %p218_p9, %p215_p8 }
  0x1b   :  { %223 = shalt.err (!%p220_p10)
}
  0x1c   :  { %s224_s9 = scalar_lea.vmem %s29_s28, 128  ;;  %s228_s0 = scalar_lea.vmem %s29_s28, 2048 }
  0x1d   :  { %p225_p11 = scmp.ne.s32.totalorder %s29_s28, %s224_s9  ;;  %p229_p12 = scmp.lt.s32.totalorder %s29_s28, %s29_s28 }
  0x1e   :  { %p230_p13 = scmp.lt.s32.totalorder %s228_s0, %s224_s9 }
  0x20   :  { %p231_p0 = por %p230_p13, %p229_p12 }
  0x22   :  { %p232_p1 = pnand %p231_p0, %p225_p11 }
  0x24   :  { %235 = shalt.err (!%p232_p1)
}
  0x25   :  { %34 = dma.hbm_to_vmem [thread:$0]  %s330_s1, 128, %s29_s28, [#allocation6], %s265_s23, %s265_s23, %s266_s24  }
  0x26   :  { %258 = dma.done.wait [#allocation3], 2048  }
  0x27   :  { %259 = vsyncadd [#allocation3], 4294965248 }
  0x28   :  { %260 = dma.done.wait [#allocation6], 2048  }
  0x29   :  { %261 = vsyncadd [#allocation6], 4294965248  ;;  %v91_v0 = vld [vmem:[#allocation5] sm:$0xff]  ;;  %v92_v2 = vld [vmem:[#allocation5 + $0x8] sm:$0xff]  ;;  %v144_v32 = vlaneseq  ;;  %v268_v36 = vmov 0  }
  0x2a   :  { %107 = vxpose.xlu0.b32.start [1/16] (narrow) %v91_v0, 16  ;;  %v43_v1 = vld [vmem:[#allocation2] sm:$0xff]  ;;  %v44_v3 = vld [vmem:[#allocation2 + $0x8] sm:$0xff]  ;;  %v93_v4 = vld [vmem:[#allocation5 + $0x10] sm:$0xff] }
  0x2b   :  { %59 = vxpose.xlu1.b32.start [1/16] (narrow) %v43_v1, 16  ;;  %v45_v5 = vld [vmem:[#allocation2 + $0x10] sm:$0xff]  ;;  %v94_v6 = vld [vmem:[#allocation5 + $0x18] sm:$0xff]  ;;  %v95_v8 = vld [vmem:[#allocation5 + $0x20] sm:$0xff]  ;;  %v145_v34 = vshrl.u32 %v144_v32, 7 }
  0x2c   :  { %v46_v7 = vld [vmem:[#allocation2 + $0x18] sm:$0xff]  ;;  %v47_v9 = vld [vmem:[#allocation2 + $0x20] sm:$0xff]  ;;  %v96_v10 = vld [vmem:[#allocation5 + $0x28] sm:$0xff] }
  0x2d   :  { %v48_v11 = vld [vmem:[#allocation2 + $0x28] sm:$0xff]  ;;  %v97_v12 = vld [vmem:[#allocation5 + $0x30] sm:$0xff]  ;;  %v98_v14 = vld [vmem:[#allocation5 + $0x38] sm:$0xff]  ;;  %v146_v35 = vsub.s32 0, %v145_v34 }
  0x2e   :  { %108 = vxpose.xlu0.b32.cont [2/16] (narrow) %v92_v2, 16  ;;  %v49_v13 = vld [vmem:[#allocation2 + $0x30] sm:$0xff]  ;;  %v50_v15 = vld [vmem:[#allocation2 + $0x38] sm:$0xff]  ;;  %v99_v16 = vld [vmem:[#allocation5 + $0x40] sm:$0xff] }
  0x2f   :  { %60 = vxpose.xlu1.b32.cont [2/16] (narrow) %v44_v3, 16  ;;  %v51_v17 = vld [vmem:[#allocation2 + $0x40] sm:$0xff]  ;;  %v100_v18 = vld [vmem:[#allocation5 + $0x48] sm:$0xff]  ;;  %v101_v20 = vld [vmem:[#allocation5 + $0x50] sm:$0xff] }
  0x30   :  { %v52_v19 = vld [vmem:[#allocation2 + $0x48] sm:$0xff]  ;;  %v53_v21 = vld [vmem:[#allocation2 + $0x50] sm:$0xff]  ;;  %v102_v22 = vld [vmem:[#allocation5 + $0x58] sm:$0xff] }
  0x31   :  { %v54_v23 = vld [vmem:[#allocation2 + $0x58] sm:$0xff]  ;;  %v103_v24 = vld [vmem:[#allocation5 + $0x60] sm:$0xff]  ;;  %v104_v26 = vld [vmem:[#allocation5 + $0x68] sm:$0xff] }
  0x32   :  { %109 = vxpose.xlu0.b32.cont [3/16] (narrow) %v93_v4, 16  ;;  %v55_v25 = vld [vmem:[#allocation2 + $0x60] sm:$0xff]  ;;  %v56_v27 = vld [vmem:[#allocation2 + $0x68] sm:$0xff]  ;;  %v105_v28 = vld [vmem:[#allocation5 + $0x70] sm:$0xff] }
  0x33   :  { %61 = vxpose.xlu1.b32.cont [3/16] (narrow) %v45_v5, 16  ;;  %v57_v29 = vld [vmem:[#allocation2 + $0x70] sm:$0xff]  ;;  %v106_v30 = vld [vmem:[#allocation5 + $0x78] sm:$0xff]  ;;  %v139_v33 = vld [vmem:[%s331_s2] sm:$0x1]  ;;  %s269_s2 = smov [#allocation7]  }
  0x34   :  { %v58_v31 = vld [vmem:[#allocation2 + $0x78] sm:$0xff]  ;;  %vm140_vm0 = vcmp.gt.f32.partialorder %v139_v33, 0.5  ;;  %s172_s13 = sshll.u32 %s269_s2, 4  ;;  %s173_s13 = int_to_ptr.vmem [resolvable:$true] %s172_s13 }
  0x35   :  { %v143_v37 = vsel %vm140_vm0, 1, %v268_v36  ;;  %s236_s14 = scalar_lea.vmem %s173_s13, 16  ;;  %s240_s15 = scalar_lea.vmem %s173_s13, 32 }
  0x36   :  { %110 = vxpose.xlu0.b32.cont [4/16] (narrow) %v94_v6, 16  ;;  %v147_v38 = vrot.slane %v143_v37, %v146_v35  ;;  %p237_p2 = scmp.ne.s32.totalorder %s173_s13, %s236_s14  ;;  %p241_p3 = scmp.lt.s32.totalorder %s173_s13, %s173_s13 }
  0x37   :  { %62 = vxpose.xlu1.b32.cont [4/16] (narrow) %v46_v7, 16  ;;  %p242_p4 = scmp.lt.s32.totalorder %s240_s15, %s236_s14 }
  0x38   :  { %vm148_vm1 = vcmp.eq.s32.totalorder %v147_v38, 1 }
  0x39   :  { %p243_p5 = por %p242_p4, %p241_p3 }
  0x3a   :  { %111 = vxpose.xlu0.b32.cont [5/16] (narrow) %v95_v8, 16 }
  0x3b   :  { %63 = vxpose.xlu1.b32.cont [5/16] (narrow) %v47_v9, 16  ;;  %p244_p6 = pnand %p243_p5, %p237_p2 }
  0x3e   :  { %112 = vxpose.xlu0.b32.cont [6/16] (narrow) %v96_v10, 16 }
  0x3f   :  { %64 = vxpose.xlu1.b32.cont [6/16] (narrow) %v48_v11, 16 }
  0x42   :  { %113 = vxpose.xlu0.b32.cont [7/16] (narrow) %v97_v12, 16 }
  0x43   :  { %65 = vxpose.xlu1.b32.cont [7/16] (narrow) %v49_v13, 16 }
  0x46   :  { %114 = vxpose.xlu0.b32.cont [8/16] (narrow) %v98_v14, 16 }
  0x47   :  { %66 = vxpose.xlu1.b32.cont [8/16] (narrow) %v50_v15, 16 }
  0x4a   :  { %115 = vxpose.xlu0.b32.cont [9/16] (narrow) %v99_v16, 16 }
  0x4b   :  { %67 = vxpose.xlu1.b32.cont [9/16] (narrow) %v51_v17, 16 }
  0x4e   :  { %116 = vxpose.xlu0.b32.cont [10/16] (narrow) %v100_v18, 16 }
  0x4f   :  { %68 = vxpose.xlu1.b32.cont [10/16] (narrow) %v52_v19, 16 }
  0x52   :  { %117 = vxpose.xlu0.b32.cont [11/16] (narrow) %v101_v20, 16 }
  0x53   :  { %69 = vxpose.xlu1.b32.cont [11/16] (narrow) %v53_v21, 16 }
  0x56   :  { %118 = vxpose.xlu0.b32.cont [12/16] (narrow) %v102_v22, 16 }
  0x57   :  { %70 = vxpose.xlu1.b32.cont [12/16] (narrow) %v54_v23, 16 }
  0x5a   :  { %119 = vxpose.xlu0.b32.cont [13/16] (narrow) %v103_v24, 16 }
  0x5b   :  { %71 = vxpose.xlu1.b32.cont [13/16] (narrow) %v55_v25, 16 }
  0x5e   :  { %120 = vxpose.xlu0.b32.cont [14/16] (narrow) %v104_v26, 16 }
  0x5f   :  { %72 = vxpose.xlu1.b32.cont [14/16] (narrow) %v56_v27, 16 }
  0x62   :  { %121 = vxpose.xlu0.b32.cont [15/16] (narrow) %v105_v28, 16 }
  0x63   :  { %73 = vxpose.xlu1.b32.cont [15/16] (narrow) %v57_v29, 16 }
  0x66   :  { %122 = vxpose.xlu0.b32.end [16/16] (narrow) %v106_v30, 16 }
  0x67   :  { %74 = vxpose.xlu1.b32.end [16/16] (narrow) %v58_v31, 16 }
  0xaa   :  { %v123_v39 = vpop.trf.xlu0 }
  0xab   :  { %v141_v40 = vsub.f32 1.0, %v123_v39  ;;  %v75_v45 = vpop.trf.xlu1 }
  0xad   :  { %v149_v41 = vsel %vm148_vm1, %v123_v39, %v141_v40 }
  0xae   :  { %188 = vlog2.f32 %v149_v41  ;;  %v124_v42 = vpop.trf.xlu0 }
  0xaf   :  { %v142_v43 = vsub.f32 1.0, %v124_v42  ;;  %v76_v49 = vpop.trf.xlu1 }
  0xb1   :  { %v150_v44 = vsel %vm148_vm1, %v124_v42, %v142_v43 }
  0xb2   :  { %190 = vlog2.f32 %v150_v44 }
  0xb8   :  { %v189_v46 = vpop.eup %188 }
  0xb9   :  { %v152_v47 = vmul.f32 0.6931472, %v189_v46 }
  0xbb   :  { %v155_v51 = vmul.f32 %v152_v47, %v75_v45 }
  0xbc   :  { %v191_v48 = vpop.eup %190 }
  0xbd   :  { %v154_v50 = vmul.f32 0.6931472, %v191_v48 }
  0xbf   :  { %v156_v52 = vmul.f32 %v154_v50, %v76_v49 }
  0xc1   :  { %v157_v53 = vadd.f32 %v156_v52, %v155_v51 }
  0xc3   :  { %v158_v54 = vrot.slane %v157_v53, 4 }
  0xc5   :  { %v159_v55 = vadd.f32 %v158_v54, %v157_v53 }
  0xc7   :  { %v160_v56 = vrot.slane %v159_v55, 2 }
  0xc9   :  { %v161_v57 = vadd.f32 %v160_v56, %v159_v55 }
  0xcb   :  { %v162_v58 = vrot.slane %v161_v57, 1 }
  0xcd   :  { %v163_v59 = vadd.f32 %v162_v58, %v161_v57 }
  0xcf   :  { %v164_v60 = vsub.f32 0.0, %v163_v59 }
  0xd1   :  { %165 = vst [vmem:[#allocation7] sm:$0x1] %v164_v60 }
  0xd2   :  { %247 = shalt.err (!%p244_p6)
}
  0xd3   :  { %s248_s18 = scalar_lea.hbm %s332_s3, 16 }
  0xd4   :  { %p249_p7 = scmp.ne.s32.totalorder %s332_s3, %s248_s18  ;;  %p252_p8 = scmp.lt.u32.totalorder %s248_s18, %s332_s3 }
  0xd6   :  { %p254_p9 = pnand %p252_p8, %p249_p7 }
  0xd8   :  { %257 = shalt.err (!%p254_p9)
}
  0xd9   :  { %175 = dma.vmem_to_hbm [thread:$0]  %s173_s13, 16, %s332_s3, [#allocation4]  }
  0xda   :  { %262 = dma.done.wait [#allocation4], 16  }
  0xdb   :  { %263 = vsyncadd [#allocation4], 4294967280 }
  0xdc   :  { %179 = vsyncpa [#allocation3], 1 }
  0xdd   :  { %180 = vsyncpa [#allocation6], 1 }
  0xde   :  { %181 = vsyncpa [#allocation4], 1 }

</bundles_post_ra>
